<compile_context>
chip_gen: v5e
topology: v5e:2x2
jax: 0.10.0
libtpu: 0.0.40
codegen_flags: <defaults>
</compile_context>

<pallas_src>
import functools

import jax
import jax.numpy as jnp
from jax.experimental import pallas as pl
from jax.experimental.pallas import tpu as pltpu

LEAKY_SLOPE = 0.01          # nn.LeakyReLU() default negative_slope
BN_EPS = 1e-5               # nn.BatchNorm1d default eps
WIDTHS_PER_GROUP = [64, 64, 32, 16, 8, 2]

# Matmul operand dtype.  Set to jnp.bfloat16 on v6e/v7x to halve MXU passes
# (per review); kept f32 by default because in this fused design the kernel is
# HBM-bound (input stays f32 in HBM, intermediates never leave VMEM) and f32
# keeps closer numerical parity with the PyTorch reference.
MATMUL_DTYPE = jnp.float32


# ----------------------------------------------------------------------------
# Kernel
# ----------------------------------------------------------------------------
def _make_branch_kernel(num_layers, fuse_softmax):
    """Fused: 6 x [block-diag matmul + folded bias] (+LeakyReLU) + pair softmax."""

    def kernel(x_ref, *refs):
        o_ref = refs[-1]
        params = refs[:-1]                               # [W0,b0, ..., W5,b5]
        h = x_ref[0].astype(jnp.float32)                 # (C_in, TL) channels-first
        for li in range(num_layers):
            w = params[2 * li][...]                      # (C_out, C_in) block-diag
            b = params[2 * li + 1][...]                  # (C_out, 1)  (bias+BN folded)
            h = jnp.dot(w, h.astype(w.dtype),
                        preferred_element_type=jnp.float32) + b
            if li < num_layers - 1:
                h = jnp.where(h > 0, h, LEAKY_SLOPE * h)  # LeakyReLU

        if fuse_softmax:
            # softmax over adjacent-position pairs of the same channel row:
            # even lane l pairs with l+1, odd lane l pairs with l-1.
            n = h.shape[-1]
            nbr_hi = pltpu.roll(h, shift=n - 1, axis=1)   # value at l+1 (mod n)
            nbr_lo = pltpu.roll(h, shift=1, axis=1)       # value at l-1 (mod n)
            lane = jax.lax.broadcasted_iota(jnp.int32, h.shape, dimension=1)
            partner = jnp.where((lane & 1) == 0, nbr_hi, nbr_lo)
            h = 1.0 / (1.0 + jnp.exp(partner - h))        # pairwise softmax (stable)

        o_ref[0] = h.astype(o_ref.dtype)                  # (2G, TL), lane-dense

    return kernel


# ----------------------------------------------------------------------------
# Parameters
# ----------------------------------------------------------------------------
def init_params(key, lighting_pattern_num, layers):
    """Raw params matching ChooseBranchNet.__init__ (deterministic).

    Conv1d: weight ~ N(0, 0.1) of shape (C_out, C_in/G), bias = 0.
    BatchNorm1d defaults: gamma=1, beta=0, running_mean=0, running_var=1.
    """
    G = layers - 1
    in_pg = lighting_pattern_num
    raw = []
    for li, out_pg in enumerate(WIDTHS_PER_GROUP):
        key, kw = jax.random.split(key)
        c_out = G * out_pg
        layer = {
            "weight": 0.1 * jax.random.normal(kw, (c_out, in_pg), jnp.float32),
            "bias": jnp.zeros((c_out,), jnp.float32),
        }
        if li < len(WIDTHS_PER_GROUP) - 1:   # BN follows every conv but the last
            layer.update(gamma=jnp.ones((c_out,), jnp.float32),
                         beta=jnp.zeros((c_out,), jnp.float32),
                         running_mean=jnp.zeros((c_out,), jnp.float32),
                         running_var=jnp.ones((c_out,), jnp.float32))
        raw.append(layer)
        in_pg = out_pg
    return raw


def fold_params(raw, layers, matmul_dtype=MATMUL_DTYPE):
    """Fold Conv bias + (inference-mode) BN into per-layer (W_dense, b).

    W_dense is the block-diagonal dense equivalent of the grouped conv,
    shaped (C_out, C_in) for the channels-first matmul y = W @ x + b.
    """
    G = layers - 1
    flat = []
    for layer in raw:
        w = layer["weight"]                         # (C_out, C_in/G)
        c_out, in_pg = w.shape
        out_pg = c_out // G
        c_in = in_pg * G
        wd = jnp.zeros((c_out, c_in), jnp.float32)
        for g in range(G):
            wd = wd.at[g * out_pg:(g + 1) * out_pg,
                       g * in_pg:(g + 1) * in_pg].set(
                           w[g * out_pg:(g + 1) * out_pg, :])
        b = layer["bias"]
        if "gamma" in layer:
            # TODO(synk): BatchNorm1d folded in inference mode (running stats),
            # not training-mode batch statistics.
            scale = layer["gamma"] / jnp.sqrt(layer["running_var"] + BN_EPS)
            shift = layer["beta"] - layer["running_mean"] * scale
            wd = wd * scale[:, None]
            b = b * scale + shift
        flat += [wd.astype(matmul_dtype), b.reshape(c_out, 1).astype(jnp.float32)]
    return flat


# ----------------------------------------------------------------------------
# Forward wrapper
# ----------------------------------------------------------------------------
@functools.partial(jax.jit, static_argnums=(2,))
def choose_branch_forward(x, flat_params, layers):
    """x: (B, C_in, L) float32 (PyTorch NCL).  Returns (B*L, G, 2) softmax."""
    G = layers - 1
    B, C_in, L = x.shape
    c_out_final = 2 * G
    num_layers = len(flat_params) // 2

    TL = L if L <= 2048 else 2048          # full-L tile or 128-multiple tile
    fuse_softmax = (L % 2 == 0)            # pairs stay within a channel row

    in_specs = [pl.BlockSpec((1, C_in, TL), lambda b, j: (b, 0, j))]
    for p in flat_params:                  # weights/biases: whole, resident
        in_specs.append(pl.BlockSpec(p.shape, lambda b, j: (0, 0)))
    out_specs = pl.BlockSpec((1, c_out_final, TL), lambda b, j: (b, 0, j))

    flops = 2 * B * L * sum(
        int(flat_params[2 * i].shape[0] * flat_params[2 * i].shape[1])
        for i in range(num_layers))
    bytes_accessed = int(x.size * x.dtype.itemsize
                         + B * c_out_final * L * 4
                         + sum(int(p.size) * p.dtype.itemsize for p in flat_params))
    transcendentals = int(B * L * c_out_final) if fuse_softmax else 0

    y_ncl = pl.pallas_call(
        _make_branch_kernel(num_layers, fuse_softmax),
        grid=(B, pl.cdiv(L, TL)),
        in_specs=in_specs,
        out_specs=out_specs,
        out_shape=jax.ShapeDtypeStruct((B, c_out_final, L), jnp.float32),
        compiler_params=pltpu.CompilerParams(
            dimension_semantics=("parallel", "parallel"),
            vmem_limit_bytes=32 * 1024 * 1024),
        cost_estimate=pl.CostEstimate(flops=flops,
                                      transcendentals=transcendentals,
                                      bytes_accessed=bytes_accessed),
    )(x, *flat_params)

    if fuse_softmax:
        # Kernel already wrote probabilities in NCL order; PyTorch's
        # reshape([-1, G, 2]) is a pure metadata reshape of this buffer.
        return y_ncl.reshape(-1, G, 2)
    # Odd L: softmax pairs cross channel rows -> leave the tiny softmax to XLA.
    return jax.nn.softmax(y_ncl.reshape(-1, G, 2), axis=-1)


# ----------------------------------------------------------------------------
# Pure-JAX reference (for in-script correctness check)
# ----------------------------------------------------------------------------
def _reference_forward(x, raw, layers):
    G = layers - 1
    B, _, L = x.shape
    h = x
    for layer in raw:
        w = layer["weight"]                            # (C_out, C_in/G)
        c_out, in_pg = w.shape
        out_pg = c_out // G
        hg = h.reshape(B, G, in_pg, L)
        wg = w.reshape(G, out_pg, in_pg)
        y = jnp.einsum("goi,bgil->bgol", wg, hg).reshape(B, c_out, L)
        y = y + layer["bias"][None, :, None]
        if "gamma" in layer:
            scale = layer["gamma"] / jnp.sqrt(layer["running_var"] + BN_EPS)
            shift = layer["beta"] - layer["running_mean"] * scale
            y = y * scale[None, :, None] + shift[None, :, None]
            y = jnp.where(y > 0, y, LEAKY_SLOPE * y)
        h = y
    return jax.nn.softmax(h.reshape(-1, G, 2), axis=-1)


if __name__ == "__main__":
    # args consistent with the module: layers=3 -> G=2 groups,
    # lighting_pattern_num=8 -> C_in = 8 * 2 = 16, widths [128,128,64,32,16,4].
    args = {"classifier_num": 1, "lighting_pattern_num": 8, "layers": 3}
    G = args["layers"] - 1
    C_in = args["lighting_pattern_num"] * G
    B, L = 2, 16                                  # small, even L (fused softmax)

    key = jax.random.PRNGKey(0)
    key, kx = jax.random.split(key)
    x = jax.random.normal(kx, (B, C_in, L), dtype=jnp.float32)

    raw = init_params(key, args["lighting_pattern_num"], args["layers"])
    params = fold_params(raw, args["layers"])

    out = jax.block_until_ready(choose_branch_forward(x, params, args["layers"]))

    assert out.shape == (B * L, G, 2), out.shape
    assert out.dtype == jnp.float32
    assert bool(jnp.allclose(jnp.sum(out, axis=-1), 1.0, atol=1e-5))

    ref = _reference_forward(x, raw, args["layers"])
    assert ref.shape == out.shape
    assert bool(jnp.allclose(out, ref, atol=2e-2)), float(jnp.max(jnp.abs(out - ref)))

    print("KERNEL_OK")
</pallas_src>

<mosaic_0001>
module attributes {stable_mosaic.version = 11 : i64} {
  func.func @kernel(%arg0: i32, %arg1: i32, %arg2: memref<1x16x16xf32, #tpu.memory_space<vmem>>, %arg3: memref<128x16xf32, #tpu.memory_space<vmem>>, %arg4: memref<128x1xf32, #tpu.memory_space<vmem>>, %arg5: memref<128x128xf32, #tpu.memory_space<vmem>>, %arg6: memref<128x1xf32, #tpu.memory_space<vmem>>, %arg7: memref<64x128xf32, #tpu.memory_space<vmem>>, %arg8: memref<64x1xf32, #tpu.memory_space<vmem>>, %arg9: memref<32x64xf32, #tpu.memory_space<vmem>>, %arg10: memref<32x1xf32, #tpu.memory_space<vmem>>, %arg11: memref<16x32xf32, #tpu.memory_space<vmem>>, %arg12: memref<16x1xf32, #tpu.memory_space<vmem>>, %arg13: memref<4x16xf32, #tpu.memory_space<vmem>>, %arg14: memref<4x1xf32, #tpu.memory_space<vmem>>, %arg15: memref<1x4x16xf32, #tpu.memory_space<vmem>>) attributes {dimension_semantics = [#tpu.dimension_semantics<parallel>, #tpu.dimension_semantics<parallel>], iteration_bounds = array<i64: 2, 1>, scalar_prefetch = 0 : i64, scratch_operands = 0 : i64, tpu.core_type = #tpu.core_type<tc>, window_params = [{transform_indices = @transform_0, window_bounds = array<i64: 1, 16, 16>}, {pipeline_mode = #tpu.pipeline_mode<synchronous>, transform_indices = @transform_1, window_bounds = array<i64: 128, 16>}, {pipeline_mode = #tpu.pipeline_mode<synchronous>, transform_indices = @transform_2, window_bounds = array<i64: 128, 1>}, {pipeline_mode = #tpu.pipeline_mode<synchronous>, transform_indices = @transform_3, window_bounds = array<i64: 128, 128>}, {pipeline_mode = #tpu.pipeline_mode<synchronous>, transform_indices = @transform_4, window_bounds = array<i64: 128, 1>}, {pipeline_mode = #tpu.pipeline_mode<synchronous>, transform_indices = @transform_5, window_bounds = array<i64: 64, 128>}, {pipeline_mode = #tpu.pipeline_mode<synchronous>, transform_indices = @transform_6, window_bounds = array<i64: 64, 1>}, {pipeline_mode = #tpu.pipeline_mode<synchronous>, transform_indices = @transform_7, window_bounds = array<i64: 32, 64>}, {pipeline_mode = #tpu.pipeline_mode<synchronous>, transform_indices = @transform_8, window_bounds = array<i64: 32, 1>}, {pipeline_mode = #tpu.pipeline_mode<synchronous>, transform_indices = @transform_9, window_bounds = array<i64: 16, 32>}, {pipeline_mode = #tpu.pipeline_mode<synchronous>, transform_indices = @transform_10, window_bounds = array<i64: 16, 1>}, {pipeline_mode = #tpu.pipeline_mode<synchronous>, transform_indices = @transform_11, window_bounds = array<i64: 4, 16>}, {pipeline_mode = #tpu.pipeline_mode<synchronous>, transform_indices = @transform_12, window_bounds = array<i64: 4, 1>}, {transform_indices = @transform_13, window_bounds = array<i64: 1, 4, 16>}]} {
    %c0 = arith.constant 0 : index
    %c0_0 = arith.constant 0 : index
    %c0_1 = arith.constant 0 : index
    %0 = vector.load %arg2[%c0, %c0_0, %c0_1] : memref<1x16x16xf32, #tpu.memory_space<vmem>>, vector<1x16x16xf32>
    %1 = vector.shape_cast %0 : vector<1x16x16xf32> to vector<16x16xf32>
    %c0_2 = arith.constant 0 : index
    %c0_3 = arith.constant 0 : index
    %2 = vector.load %arg3[%c0_2, %c0_3] : memref<128x16xf32, #tpu.memory_space<vmem>>, vector<128x16xf32>
    %c0_4 = arith.constant 0 : index
    %c0_5 = arith.constant 0 : index
    %3 = vector.load %arg4[%c0_4, %c0_5] : memref<128x1xf32, #tpu.memory_space<vmem>>, vector<128x1xf32>
    %cst = arith.constant dense<0.000000e+00> : vector<128x16xf32>
    %4 = tpu.matmul %2, %1, %cst {dimension_numbers = #tpu.dot_dimension_numbers<[1], [0], [0], [1], [0, 0, 1, 1], [], []>} : vector<128x16xf32>, vector<16x16xf32>, vector<128x16xf32> -> vector<128x16xf32>
    %5 = vector.broadcast %3 : vector<128x1xf32> to vector<128x16xf32>
    %6 = arith.addf %4, %5 : vector<128x16xf32>
    %cst_6 = arith.constant 0.000000e+00 : f32
    %7 = vector.broadcast %cst_6 : f32 to vector<128x16xf32>
    %8 = arith.cmpf ogt, %6, %7 : vector<128x16xf32>
    %cst_7 = arith.constant 0.00999999977 : f32
    %9 = vector.broadcast %cst_7 : f32 to vector<128x16xf32>
    %10 = arith.mulf %9, %6 : vector<128x16xf32>
    %11 = arith.select %8, %6, %10 : vector<128x16xi1>, vector<128x16xf32>
    %c0_8 = arith.constant 0 : index
    %c0_9 = arith.constant 0 : index
    %12 = vector.load %arg5[%c0_8, %c0_9] : memref<128x128xf32, #tpu.memory_space<vmem>>, vector<128x128xf32>
    %c0_10 = arith.constant 0 : index
    %c0_11 = arith.constant 0 : index
    %13 = vector.load %arg6[%c0_10, %c0_11] : memref<128x1xf32, #tpu.memory_space<vmem>>, vector<128x1xf32>
    %cst_12 = arith.constant dense<0.000000e+00> : vector<128x16xf32>
    %14 = tpu.matmul %12, %11, %cst_12 {dimension_numbers = #tpu.dot_dimension_numbers<[1], [0], [0], [1], [0, 0, 1, 1], [], []>} : vector<128x128xf32>, vector<128x16xf32>, vector<128x16xf32> -> vector<128x16xf32>
    %15 = vector.broadcast %13 : vector<128x1xf32> to vector<128x16xf32>
    %16 = arith.addf %14, %15 : vector<128x16xf32>
    %cst_13 = arith.constant 0.000000e+00 : f32
    %17 = vector.broadcast %cst_13 : f32 to vector<128x16xf32>
    %18 = arith.cmpf ogt, %16, %17 : vector<128x16xf32>
    %cst_14 = arith.constant 0.00999999977 : f32
    %19 = vector.broadcast %cst_14 : f32 to vector<128x16xf32>
    %20 = arith.mulf %19, %16 : vector<128x16xf32>
    %21 = arith.select %18, %16, %20 : vector<128x16xi1>, vector<128x16xf32>
    %c0_15 = arith.constant 0 : index
    %c0_16 = arith.constant 0 : index
    %22 = vector.load %arg7[%c0_15, %c0_16] : memref<64x128xf32, #tpu.memory_space<vmem>>, vector<64x128xf32>
    %c0_17 = arith.constant 0 : index
    %c0_18 = arith.constant 0 : index
    %23 = vector.load %arg8[%c0_17, %c0_18] : memref<64x1xf32, #tpu.memory_space<vmem>>, vector<64x1xf32>
    %cst_19 = arith.constant dense<0.000000e+00> : vector<64x16xf32>
    %24 = tpu.matmul %22, %21, %cst_19 {dimension_numbers = #tpu.dot_dimension_numbers<[1], [0], [0], [1], [0, 0, 1, 1], [], []>} : vector<64x128xf32>, vector<128x16xf32>, vector<64x16xf32> -> vector<64x16xf32>
    %25 = vector.broadcast %23 : vector<64x1xf32> to vector<64x16xf32>
    %26 = arith.addf %24, %25 : vector<64x16xf32>
    %cst_20 = arith.constant 0.000000e+00 : f32
    %27 = vector.broadcast %cst_20 : f32 to vector<64x16xf32>
    %28 = arith.cmpf ogt, %26, %27 : vector<64x16xf32>
    %cst_21 = arith.constant 0.00999999977 : f32
    %29 = vector.broadcast %cst_21 : f32 to vector<64x16xf32>
    %30 = arith.mulf %29, %26 : vector<64x16xf32>
    %31 = arith.select %28, %26, %30 : vector<64x16xi1>, vector<64x16xf32>
    %c0_22 = arith.constant 0 : index
    %c0_23 = arith.constant 0 : index
    %32 = vector.load %arg9[%c0_22, %c0_23] : memref<32x64xf32, #tpu.memory_space<vmem>>, vector<32x64xf32>
    %c0_24 = arith.constant 0 : index
    %c0_25 = arith.constant 0 : index
    %33 = vector.load %arg10[%c0_24, %c0_25] : memref<32x1xf32, #tpu.memory_space<vmem>>, vector<32x1xf32>
    %cst_26 = arith.constant dense<0.000000e+00> : vector<32x16xf32>
    %34 = tpu.matmul %32, %31, %cst_26 {dimension_numbers = #tpu.dot_dimension_numbers<[1], [0], [0], [1], [0, 0, 1, 1], [], []>} : vector<32x64xf32>, vector<64x16xf32>, vector<32x16xf32> -> vector<32x16xf32>
    %35 = vector.broadcast %33 : vector<32x1xf32> to vector<32x16xf32>
    %36 = arith.addf %34, %35 : vector<32x16xf32>
    %cst_27 = arith.constant 0.000000e+00 : f32
    %37 = vector.broadcast %cst_27 : f32 to vector<32x16xf32>
    %38 = arith.cmpf ogt, %36, %37 : vector<32x16xf32>
    %cst_28 = arith.constant 0.00999999977 : f32
    %39 = vector.broadcast %cst_28 : f32 to vector<32x16xf32>
    %40 = arith.mulf %39, %36 : vector<32x16xf32>
    %41 = arith.select %38, %36, %40 : vector<32x16xi1>, vector<32x16xf32>
    %c0_29 = arith.constant 0 : index
    %c0_30 = arith.constant 0 : index
    %42 = vector.load %arg11[%c0_29, %c0_30] : memref<16x32xf32, #tpu.memory_space<vmem>>, vector<16x32xf32>
    %c0_31 = arith.constant 0 : index
    %c0_32 = arith.constant 0 : index
    %43 = vector.load %arg12[%c0_31, %c0_32] : memref<16x1xf32, #tpu.memory_space<vmem>>, vector<16x1xf32>
    %cst_33 = arith.constant dense<0.000000e+00> : vector<16x16xf32>
    %44 = tpu.matmul %42, %41, %cst_33 {dimension_numbers = #tpu.dot_dimension_numbers<[1], [0], [0], [1], [0, 0, 1, 1], [], []>} : vector<16x32xf32>, vector<32x16xf32>, vector<16x16xf32> -> vector<16x16xf32>
    %45 = vector.broadcast %43 : vector<16x1xf32> to vector<16x16xf32>
    %46 = arith.addf %44, %45 : vector<16x16xf32>
    %cst_34 = arith.constant 0.000000e+00 : f32
    %47 = vector.broadcast %cst_34 : f32 to vector<16x16xf32>
    %48 = arith.cmpf ogt, %46, %47 : vector<16x16xf32>
    %cst_35 = arith.constant 0.00999999977 : f32
    %49 = vector.broadcast %cst_35 : f32 to vector<16x16xf32>
    %50 = arith.mulf %49, %46 : vector<16x16xf32>
    %51 = arith.select %48, %46, %50 : vector<16x16xi1>, vector<16x16xf32>
    %c0_36 = arith.constant 0 : index
    %c0_37 = arith.constant 0 : index
    %52 = vector.load %arg13[%c0_36, %c0_37] : memref<4x16xf32, #tpu.memory_space<vmem>>, vector<4x16xf32>
    %c0_38 = arith.constant 0 : index
    %c0_39 = arith.constant 0 : index
    %53 = vector.load %arg14[%c0_38, %c0_39] : memref<4x1xf32, #tpu.memory_space<vmem>>, vector<4x1xf32>
    %cst_40 = arith.constant dense<0.000000e+00> : vector<4x16xf32>
    %54 = tpu.matmul %52, %51, %cst_40 {dimension_numbers = #tpu.dot_dimension_numbers<[1], [0], [0], [1], [0, 0, 1, 1], [], []>} : vector<4x16xf32>, vector<16x16xf32>, vector<4x16xf32> -> vector<4x16xf32>
    %55 = vector.broadcast %53 : vector<4x1xf32> to vector<4x16xf32>
    %56 = arith.addf %54, %55 : vector<4x16xf32>
    %c15_i32 = arith.constant 15 : i32
    %57 = tpu.dynamic_rotate %56 by %c15_i32 dim 1 : vector<4x16xf32>, i32 -> vector<4x16xf32>
    %c1_i32 = arith.constant 1 : i32
    %58 = tpu.dynamic_rotate %56 by %c1_i32 dim 1 : vector<4x16xf32>, i32 -> vector<4x16xf32>
    %59 = tpu.iota {dimensions = array<i32: 1>} : vector<4x16xi32>
    %c1_i32_41 = arith.constant 1 : i32
    %60 = vector.broadcast %c1_i32_41 : i32 to vector<4x16xi32>
    %61 = arith.andi %59, %60 : vector<4x16xi32>
    %c0_i32 = arith.constant 0 : i32
    %62 = vector.broadcast %c0_i32 : i32 to vector<4x16xi32>
    %63 = arith.cmpi eq, %61, %62 : vector<4x16xi32>
    %64 = arith.select %63, %57, %58 : vector<4x16xi1>, vector<4x16xf32>
    %65 = arith.subf %64, %56 : vector<4x16xf32>
    %66 = math.exp %65 : vector<4x16xf32>
    %cst_42 = arith.constant 1.000000e+00 : f32
    %67 = vector.broadcast %cst_42 : f32 to vector<4x16xf32>
    %68 = arith.addf %67, %66 : vector<4x16xf32>
    %cst_43 = arith.constant 1.000000e+00 : f32
    %69 = vector.broadcast %cst_43 : f32 to vector<4x16xf32>
    %70 = arith.divf %69, %68 : vector<4x16xf32>
    %c0_44 = arith.constant 0 : index
    %c0_45 = arith.constant 0 : index
    %c0_46 = arith.constant 0 : index
    %71 = vector.load %arg15[%c0_44, %c0_45, %c0_46] : memref<1x4x16xf32, #tpu.memory_space<vmem>>, vector<1x4x16xf32>
    %72 = vector.shape_cast %71 : vector<1x4x16xf32> to vector<4x16xf32>
    %73 = vector.shape_cast %70 : vector<4x16xf32> to vector<1x4x16xf32>
    tpu.vector_store %arg15[%c0_44, %c0_45, %c0_46], %73 {strides = array<i32>} : memref<1x4x16xf32, #tpu.memory_space<vmem>>, vector<1x4x16xf32>,
    return
  }
  func.func @transform_0(%arg0: i32, %arg1: i32) -> (i32, i32, i32) {
    %c0_i32 = arith.constant 0 : i32
    %c0_i32_0 = arith.constant 0 : i32
    return %arg0, %c0_i32, %arg1 : i32, i32, i32
  }
  func.func @transform_1(%arg0: i32, %arg1: i32) -> (i32, i32) {
    %c0_i32 = arith.constant 0 : i32
    %c0_i32_0 = arith.constant 0 : i32
    %c0_i32_1 = arith.constant 0 : i32
    return %c0_i32, %c0_i32_0 : i32, i32
  }
  func.func @transform_2(%arg0: i32, %arg1: i32) -> (i32, i32) {
    %c0_i32 = arith.constant 0 : i32
    %c0_i32_0 = arith.constant 0 : i32
    %c0_i32_1 = arith.constant 0 : i32
    return %c0_i32, %c0_i32_0 : i32, i32
  }
  func.func @transform_3(%arg0: i32, %arg1: i32) -> (i32, i32) {
    %c0_i32 = arith.constant 0 : i32
    %c0_i32_0 = arith.constant 0 : i32
    %c0_i32_1 = arith.constant 0 : i32
    return %c0_i32, %c0_i32_0 : i32, i32
  }
  func.func @transform_4(%arg0: i32, %arg1: i32) -> (i32, i32) {
    %c0_i32 = arith.constant 0 : i32
    %c0_i32_0 = arith.constant 0 : i32
    %c0_i32_1 = arith.constant 0 : i32
    return %c0_i32, %c0_i32_0 : i32, i32
  }
  func.func @transform_5(%arg0: i32, %arg1: i32) -> (i32, i32) {
    %c0_i32 = arith.constant 0 : i32
    %c0_i32_0 = arith.constant 0 : i32
    %c0_i32_1 = arith.constant 0 : i32
    return %c0_i32, %c0_i32_0 : i32, i32
  }
  func.func @transform_6(%arg0: i32, %arg1: i32) -> (i32, i32) {
    %c0_i32 = arith.constant 0 : i32
    %c0_i32_0 = arith.constant 0 : i32
    %c0_i32_1 = arith.constant 0 : i32
    return %c0_i32, %c0_i32_0 : i32, i32
  }
  func.func @transform_7(%arg0: i32, %arg1: i32) -> (i32, i32) {
    %c0_i32 = arith.constant 0 : i32
    %c0_i32_0 = arith.constant 0 : i32
    %c0_i32_1 = arith.constant 0 : i32
    return %c0_i32, %c0_i32_0 : i32, i32
  }
  func.func @transform_8(%arg0: i32, %arg1: i32) -> (i32, i32) {
    %c0_i32 = arith.constant 0 : i32
    %c0_i32_0 = arith.constant 0 : i32
    %c0_i32_1 = arith.constant 0 : i32
    return %c0_i32, %c0_i32_0 : i32, i32
  }
  func.func @transform_9(%arg0: i32, %arg1: i32) -> (i32, i32) {
    %c0_i32 = arith.constant 0 : i32
    %c0_i32_0 = arith.constant 0 : i32
    %c0_i32_1 = arith.constant 0 : i32
    return %c0_i32, %c0_i32_0 : i32, i32
  }
  func.func @transform_10(%arg0: i32, %arg1: i32) -> (i32, i32) {
    %c0_i32 = arith.constant 0 : i32
    %c0_i32_0 = arith.constant 0 : i32
    %c0_i32_1 = arith.constant 0 : i32
    return %c0_i32, %c0_i32_0 : i32, i32
  }
  func.func @transform_11(%arg0: i32, %arg1: i32) -> (i32, i32) {
    %c0_i32 = arith.constant 0 : i32
    %c0_i32_0 = arith.constant 0 : i32
    %c0_i32_1 = arith.constant 0 : i32
    return %c0_i32, %c0_i32_0 : i32, i32
  }
  func.func @transform_12(%arg0: i32, %arg1: i32) -> (i32, i32) {
    %c0_i32 = arith.constant 0 : i32
    %c0_i32_0 = arith.constant 0 : i32
    %c0_i32_1 = arith.constant 0 : i32
    return %c0_i32, %c0_i32_0 : i32, i32
  }
  func.func @transform_13(%arg0: i32, %arg1: i32) -> (i32, i32, i32) {
    %c0_i32 = arith.constant 0 : i32
    %c0_i32_0 = arith.constant 0 : i32
    return %arg0, %c0_i32, %arg1 : i32, i32, i32
  }
}

</mosaic_0001>

<bundles_post_ra>
// kernel: choose_branch_forward.1
= control target key start
LH: loop header
LB: loop body
LE: loop exit
PB: predicated region body
PF: predicated region fallthrough
CT: control target
= control target key end

     0   :  { %s1554_s25 = smov 0   ;;  %s1556_s26 = smov 0   ;;  %s1920_s0 = inlined_call_operand.vmem [shape: f32[2,16,16], index: 0, kind: input, shape index: {}]   ;;  %s1921_s1 = inlined_call_operand.vmem [shape: f32[128,16], index: 1, kind: input, shape index: {}]   ;;  %s1922_s2 = inlined_call_operand.vmem [shape: f32[128,1], index: 2, kind: input, shape index: {}]   ;;  %s1923_s3 = inlined_call_operand.vmem [shape: f32[128,128], index: 3, kind: input, shape index: {}]   ;;  %s1924_s4 = inlined_call_operand.vmem [shape: f32[128,1], index: 4, kind: input, shape index: {}]   ;;  %s1925_s5 = inlined_call_operand.vmem [shape: f32[64,128], index: 5, kind: input, shape index: {}]   ;;  %s1926_s6 = inlined_call_operand.vmem [shape: f32[64,1], index: 6, kind: input, shape index: {}]   ;;  %s1927_s7 = inlined_call_operand.vmem [shape: f32[32,64], index: 7, kind: input, shape index: {}]   ;;  %s1928_s8 = inlined_call_operand.vmem [shape: f32[32,1], index: 8, kind: input, shape index: {}]   ;;  %s1929_s9 = inlined_call_operand.vmem [shape: f32[16,32], index: 9, kind: input, shape index: {}]   ;;  %s1930_s10 = inlined_call_operand.vmem [shape: f32[16,1], index: 10, kind: input, shape index: {}]   ;;  %s1931_s11 = inlined_call_operand.vmem [shape: f32[4,16], index: 11, kind: input, shape index: {}]   ;;  %s1932_s12 = inlined_call_operand.vmem [shape: f32[4,1], index: 12, kind: input, shape index: {}]   ;;  %s1933_s13 = inlined_call_operand.vmem [shape: f32[2,4,16], index: 13, kind: output, shape index: {}]  }
   0x1   :  { %s1558_s27 = smov 0  }
   0x2 LB: > { %s35_s28 = sadd.s32 1, %s1474_s26  ;;  %p1375_p0 = scmp.ge.s32.totalorder %s1478_s27, 1  ;;  %s1478_s27 = sphi %s1558_s27, %s23_s27   ;;  %s1474_s26 = sphi %s1556_s26, %s1935_s26   ;;  %s1470_s25 = sphi %s1554_s25, %s1934_s25  }
   0x3   : > { %p37_p1 = scmp.ge.s32.totalorder %s35_s28, 2  ;;  %p406_p2 = scmp.lt.s32.totalorder %s1478_s27, 3 }
   0x5   : > { %s1937_s28 = smov (%p37_p1, %s35_s28), 0  ;;  %p407_p3 = pnand %p1375_p0, %p406_p2 }
   0x6   : > { %p455_p4 = scmp.lt.s32.totalorder (!%p407_p3), %s1470_s25, 1  ;;  %s1481_s22 = smov (!%p407_p3), 16  }
   0x7   : > { %410 = sbr.rel (%p407_p3) target bundleno = 1546 (0x60a), region = 72  ;;  %s1482_s23 = smov (!%p407_p3), 113  }
   0x8   : > { %s1483_s24 = smov (!%p407_p3), 127  }
   0xc   : > { %v503_v0 = vld [vmem:[%s1922_s2 + $0x78] sm:$0xff]  ;;  %v501_v1 = vld [vmem:[%s1922_s2 + $0x68] sm:$0xff]  ;;  %v1480_v2 = vmov 0   ;;  %s1939_s25 = smov (!%p455_p4, %s1470_s25), 1  ;;  %v502_v6 = vld [vmem:[%s1922_s2 + $0x70] sm:$0xff]  ;;  %vm584_vm0 = vcmask 130048  }
   0xd   : > { %1449 = vset.pattern.permute.xlu0 %v1480_v2  ;;  %1450 = vset.pattern.permute.xlu1 %v1480_v2  ;;  %v499_v3 = vld [vmem:[%s1922_s2 + $0x58] sm:$0xff]  ;;  %s1404_s18 = sshll.u32 %s1939_s25, 4  ;;  %v472_v7 = vld [vmem:[%s1921_s1] sm:$0xff]  ;;  %v498_v9 = vld [vmem:[%s1922_s2 + $0x50] sm:$0xff]  ;;  %s1378_s29 = sshll.u32 %s1939_s25, 2 }
   0xe   : > { %581 = vperm.xlu0 %1449, %v503_v0   ;;  %571 = vperm.xlu1 %1450, %v501_v1   ;;  %s462_s21 = scalar_lea.vmem %s1920_s0, %s1404_s18  ;;  %v500_v8 = vld [vmem:[%s1922_s2 + $0x60] sm:$0xff]  ;;  %v497_v10 = vld [vmem:[%s1922_s2 + $0x48] sm:$0xff]  ;;  %v495_v13 = vld [vmem:[%s1922_s2 + $0x38] sm:$0xff]  ;;  %s469_s15 = scalar_lea.vmem %s1933_s13, %s1378_s29 }
   0xf   : > { %1451 = vset.pattern.permute.xlu2 %v1480_v2  ;;  %v471_v4 = vld [vmem:[%s462_s21 + $0x8] sm:$0xff]  ;;  %v470_v5 = vld [vmem:[%s462_s21] sm:$0xff]  ;;  %v494_v14 = vld [vmem:[%s1922_s2 + $0x30] sm:$0xff] }
  0x10   : > { %561 = vperm.xlu2 %1451, %v499_v3   ;;  %647 = vmatpush.msra.mxu0 %v471_v4  ;;  %v473_v11 = vld [vmem:[%s1921_s1 + $0x8] sm:$0xff]  ;;  %v496_v12 = vld [vmem:[%s1922_s2 + $0x40] sm:$0xff]  ;;  %v474_v15 = vld [vmem:[%s1921_s1 + $0x10] sm:$0xff] }
  0x11   : > { %v493_v16 = vld [vmem:[%s1922_s2 + $0x28] sm:$0xff]  ;;  %v492_v17 = vld [vmem:[%s1922_s2 + $0x20] sm:$0xff]  ;;  %v491_v18 = vld [vmem:[%s1922_s2 + $0x18] sm:$0xff] }
  0x12   : > { %648 = vmatpush.msra.mxu0 %v470_v5  ;;  %v475_v19 = vld [vmem:[%s1921_s1 + $0x18] sm:$0xff]  ;;  %v490_v20 = vld [vmem:[%s1922_s2 + $0x10] sm:$0xff]  ;;  %v489_v21 = vld [vmem:[%s1922_s2 + $0x8] sm:$0xff] }
  0x13   : > { %1379 = vmatmul.msk.f32.vlgmr.msra.gmra.mxu0 %vm584_vm0, %v472_v7  ;;  %v488_v22 = vld [vmem:[%s1922_s2] sm:$0xff]  ;;  %v777_v24 = vld [vmem:[%s1924_s4 + $0x78] sm:$0xff]  ;;  %v477_v25 = vld [vmem:[%s1921_s1 + $0x28] sm:$0xff] }
  0x14   : > { %v476_v23 = vld [vmem:[%s1921_s1 + $0x20] sm:$0xff]  ;;  %v775_v26 = vld [vmem:[%s1924_s4 + $0x68] sm:$0xff]  ;;  %v776_v28 = vld [vmem:[%s1924_s4 + $0x70] sm:$0xff] }
  0x15   : > { %v774_v27 = vld [vmem:[%s1924_s4 + $0x60] sm:$0xff]  ;;  %v478_v29 = vld [vmem:[%s1921_s1 + $0x30] sm:$0xff]  ;;  %v771_v31 = vld [vmem:[%s1924_s4 + $0x48] sm:$0xff] }
  0x16   : > { %576 = vperm.xlu0 %1449, %v502_v6   ;;  %566 = vperm.xlu1 %1450, %v500_v8   ;;  %v772_v30 = vld [vmem:[%s1924_s4 + $0x50] sm:$0xff]  ;;  %v773_v32 = vld [vmem:[%s1924_s4 + $0x58] sm:$0xff]  ;;  %v770_v36 = vld [vmem:[%s1924_s4 + $0x40] sm:$0xff] }
  0x17   : > { %v479_v33 = vld [vmem:[%s1921_s1 + $0x38] sm:$0xff]  ;;  %v768_v35 = vld [vmem:[%s1924_s4 + $0x30] sm:$0xff]  ;;  %v480_v37 = vld [vmem:[%s1921_s1 + $0x40] sm:$0xff] }
  0x18   : > { %556 = vperm.xlu2 %1451, %v498_v9   ;;  %v769_v34 = vld [vmem:[%s1924_s4 + $0x38] sm:$0xff]  ;;  %v766_v38 = vld [vmem:[%s1924_s4 + $0x20] sm:$0xff]  ;;  %v767_v40 = vld [vmem:[%s1924_s4 + $0x28] sm:$0xff] }
  0x19   : > { %v765_v39 = vld [vmem:[%s1924_s4 + $0x18] sm:$0xff]  ;;  %v481_v41 = vld [vmem:[%s1921_s1 + $0x48] sm:$0xff]  ;;  %v762_v43 = vld [vmem:[%s1924_s4] sm:$0xff] }
  0x1a   : > { %v763_v42 = vld [vmem:[%s1924_s4 + $0x8] sm:$0xff]  ;;  %v764_v44 = vld [vmem:[%s1924_s4 + $0x10] sm:$0xff]  ;;  %v986_v48 = vld [vmem:[%s1926_s6 + $0x38] sm:$0xff] }
  0x1b   : > { %1380 = vmatmul.msk.f32.gmra.mxu0 %vm584_vm0, %v473_v11  ;;  %v482_v45 = vld [vmem:[%s1921_s1 + $0x50] sm:$0xff]  ;;  %v984_v47 = vld [vmem:[%s1926_s6 + $0x28] sm:$0xff]  ;;  %v483_v49 = vld [vmem:[%s1921_s1 + $0x58] sm:$0xff] }
  0x1c   : > { %v985_v46 = vld [vmem:[%s1926_s6 + $0x30] sm:$0xff]  ;;  %v982_v50 = vld [vmem:[%s1926_s6 + $0x18] sm:$0xff]  ;;  %v484_v52 = vld [vmem:[%s1921_s1 + $0x60] sm:$0xff] }
  0x1d   : > { %v981_v51 = vld [vmem:[%s1926_s6 + $0x10] sm:$0xff]  ;;  %v979_v53 = vld [vmem:[%s1926_s6] sm:$0xff]  ;;  %v1099_v55 = vld [vmem:[%s1928_s8 + $0x18] sm:$0xff] }
  0x1e   : > { %551 = vperm.xlu0 %1449, %v497_v10   ;;  %546 = vperm.xlu1 %1450, %v496_v12   ;;  %v983_v54 = vld [vmem:[%s1926_s6 + $0x20] sm:$0xff]  ;;  %v485_v56 = vld [vmem:[%s1921_s1 + $0x68] sm:$0xff]  ;;  %v486_v60 = vld [vmem:[%s1921_s1 + $0x70] sm:$0xff] }
  0x1f   : > { %v1097_v57 = vld [vmem:[%s1928_s8 + $0x8] sm:$0xff]  ;;  %v1096_v58 = vld [vmem:[%s1928_s8] sm:$0xff]  ;;  %v1098_v63 = vld [vmem:[%s1928_s8 + $0x10] sm:$0xff] }
  0x20   : > { %541 = vperm.xlu2 %1451, %v495_v13   ;;  %v980_v59 = vld [vmem:[%s1926_s6 + $0x8] sm:$0xff]  ;;  %v1176_v61 = vld [vmem:[%s1930_s10] sm:$0xff]  ;;  %v487_v0 = vld [vmem:[%s1921_s1 + $0x78] sm:$0xff] }
  0x21   : > { %v1225_v62 = vld [vmem:[%s1932_s12] sm:$0xf]  ;;  %v1177_v1 = vld [vmem:[%s1930_s10 + $0x8] sm:$0xff] }
  0x23   : > { %1381 = vmatmul.msk.f32.gmra.mxu0 %vm584_vm0, %v474_v15 }
  0x26   : > { %536 = vperm.xlu0 %1449, %v494_v14   ;;  %531 = vperm.xlu1 %1450, %v493_v16  }
  0x28   : > { %526 = vperm.xlu2 %1451, %v492_v17  }
  0x2b   : > { %1382 = vmatmul.msk.f32.gmra.mxu0 %vm584_vm0, %v475_v19 }
  0x2e   : > { %521 = vperm.xlu0 %1449, %v491_v18   ;;  %516 = vperm.xlu1 %1450, %v490_v20  }
  0x30   : > { %511 = vperm.xlu2 %1451, %v489_v21  }
  0x33   : > { %1383 = vmatmul.msk.f32.gmra.mxu0 %vm584_vm0, %v476_v23 }
  0x36   : > { %506 = vperm.xlu0 %1449, %v488_v22   ;;  %855 = vperm.xlu1 %1450, %v777_v24  }
  0x38   : > { %850 = vperm.xlu2 %1451, %v776_v28  }
  0x3b   : > { %1384 = vmatmul.msk.f32.gmra.mxu0 %vm584_vm0, %v477_v25 }
  0x3e   : > { %845 = vperm.xlu0 %1449, %v775_v26   ;;  %840 = vperm.xlu1 %1450, %v774_v27  }
  0x40   : > { %835 = vperm.xlu2 %1451, %v773_v32  }
  0x43   : > { %1385 = vmatmul.msk.f32.gmra.mxu0 %vm584_vm0, %v478_v29 }
  0x46   : > { %830 = vperm.xlu0 %1449, %v772_v30   ;;  %825 = vperm.xlu1 %1450, %v771_v31  }
  0x48   : > { %820 = vperm.xlu2 %1451, %v770_v36  }
  0x4b   : > { %1386 = vmatmul.msk.f32.gmra.mxu0 %vm584_vm0, %v479_v33 }
  0x4e   : > { %815 = vperm.xlu0 %1449, %v769_v34   ;;  %810 = vperm.xlu1 %1450, %v768_v35  }
  0x50   : > { %805 = vperm.xlu2 %1451, %v767_v40  }
  0x53   : > { %1387 = vmatmul.msk.f32.gmra.mxu0 %vm584_vm0, %v480_v37 }
  0x56   : > { %800 = vperm.xlu0 %1449, %v766_v38   ;;  %795 = vperm.xlu1 %1450, %v765_v39  }
  0x58   : > { %790 = vperm.xlu2 %1451, %v764_v44  }
  0x5b   : > { %1388 = vmatmul.msk.f32.gmra.mxu0 %vm584_vm0, %v481_v41 }
  0x5e   : > { %785 = vperm.xlu0 %1449, %v763_v42   ;;  %780 = vperm.xlu1 %1450, %v762_v43  }
  0x60   : > { %1024 = vperm.xlu2 %1451, %v986_v48  }
  0x63   : > { %1389 = vmatmul.msk.f32.gmra.mxu0 %vm584_vm0, %v482_v45 }
  0x66   : > { %1019 = vperm.xlu0 %1449, %v985_v46   ;;  %1014 = vperm.xlu1 %1450, %v984_v47  }
  0x68   : > { %1009 = vperm.xlu2 %1451, %v983_v54  }
  0x6a   : > { %v562_v17 = vpop.permute.xlu2 %561 }
  0x6b   : > { %1390 = vmatmul.msk.f32.gmra.mxu0 %vm584_vm0, %v483_v49 }
  0x6e   : > { %1004 = vperm.xlu0 %1449, %v982_v50   ;;  %999 = vperm.xlu1 %1450, %v981_v51  }
  0x70   : > { %994 = vperm.xlu2 %1451, %v980_v59  }
  0x72   : > { %v557_v21 = vpop.permute.xlu2 %556 }
  0x73   : > { %1391 = vmatmul.msk.f32.gmra.mxu0 %vm584_vm0, %v484_v52 }
  0x76   : > { %989 = vperm.xlu0 %1449, %v979_v53   ;;  %1117 = vperm.xlu1 %1450, %v1099_v55  }
  0x78   : > { %1112 = vperm.xlu2 %1451, %v1098_v63  }
  0x7a   : > { %v542_v29 = vpop.permute.xlu2 %541 }
  0x7b   : > { %1392 = vmatmul.msk.f32.gmra.mxu0 %vm584_vm0, %v485_v56 }
  0x7e   : > { %1107 = vperm.xlu0 %1449, %v1097_v57   ;;  %1102 = vperm.xlu1 %1450, %v1096_v58  }
  0x80   : > { %1185 = vperm.xlu2 %1451, %v1177_v1   ;;  %v582_v14 = vpop.permute.xlu0 %581  ;;  %v572_v16 = vpop.permute.xlu1 %571 }
  0x82   : > { %v527_v47 = vpop.permute.xlu2 %526 }
  0x83   : > { %1393 = vmatmul.msk.f32.gmra.mxu0 %vm584_vm0, %v486_v60 }
  0x86   : > { %1180 = vperm.xlu0 %1449, %v1176_v61   ;;  %1228 = vperm.xlu1 %1450, %v1225_v62  }
  0x88   : > { %v577_v18 = vpop.permute.xlu0 %576  ;;  %v567_v20 = vpop.permute.xlu1 %566 }
  0x8a   : > { %v512_v1 = vpop.permute.xlu2 %511 }
  0x8b   : > { %1394 = vmatmul.msk.f32.gmra.mxu0 %vm584_vm0, %v487_v0 }
  0x90   : > { %v1783_v2 = vpop.f32.mrf.mxu0  ;;  %v552_v23 = vpop.permute.xlu0 %551 }
  0x91   : > { %v547_v25 = vpop.permute.xlu1 %546 }
  0x98   : > { %v1785_v3 = vpop.f32.mrf.mxu0  ;;  %v537_v33 = vpop.permute.xlu0 %536 }
  0x99   : > { %v532_v43 = vpop.permute.xlu1 %531 }
  0xa0   : > { %v1787_v4 = vpop.f32.mrf.mxu0  ;;  %v522_v51 = vpop.permute.xlu0 %521 }
  0xa1   : > { %v517_v61 = vpop.permute.xlu1 %516 }
  0xa8   : > { %v1789_v5 = vpop.f32.mrf.mxu0 }
  0xa9   : > { %v660_v62 = vadd.f32 %v1789_v5, %v522_v51 }
  0xab   : > { %vm701_vm13 = vcmp.gt.f32.partialorder %v660_v62, 0.0 }
  0xb0   : > { %v1791_v6 = vpop.f32.mrf.mxu0 }
  0xb1   : > { %v663_v58 = vadd.f32 %v1791_v6, %v527_v47  ;;  %v654_v6 = vadd.f32 %v1785_v3, %v512_v1 }
  0xb3   : > { %vm702_vm12 = vcmp.gt.f32.partialorder %v663_v58, 0.0  ;;  %vm699_vm15 = vcmp.gt.f32.partialorder %v654_v6, 0.0 }
  0xb8   : > { %v1793_v7 = vpop.f32.mrf.mxu0 }
  0xb9   : > { %v666_v55 = vadd.f32 %v1793_v7, %v532_v43  ;;  %v657_v7 = vadd.f32 %v1787_v4, %v517_v61  ;;  %v851_v43 = vpop.permute.xlu2 %850 }
  0xbb   : > { %v719_v0 = vmul.f32 0.01, %v666_v55  ;;  %vm703_vm11 = vcmp.gt.f32.partialorder %v666_v55, 0.0  ;;  %vm700_vm14 = vcmp.gt.f32.partialorder %v657_v7, 0.0 }
  0xc0   : > { %v668_v8 = vpop.f32.mrf.mxu0 }
  0xc1   : > { %v669_v52 = vadd.f32 %v668_v8, %v537_v33  ;;  %v756_v33 = vld [vmem:[%s1923_s3 + $0x50] sm:$0xff] }
  0xc3   : > { %v720_v60 = vmul.f32 0.01, %v669_v52  ;;  %vm704_vm10 = vcmp.gt.f32.partialorder %v669_v52, 0.0 }
  0xc5   : > { %v736_v8 = vsel %vm704_vm10, %v669_v52, %v720_v60 }
  0xc8   : > { %v671_v9 = vpop.f32.mrf.mxu0 }
  0xc9   : > { %v672_v48 = vadd.f32 %v671_v9, %v542_v29  ;;  %v718_v9 = vmul.f32 0.01, %v663_v58  ;;  %v752_v29 = vld [vmem:[%s1923_s3 + $0x30] sm:$0xff] }
  0xcb   : > { %v721_v57 = vmul.f32 0.01, %v672_v48  ;;  %vm705_vm9 = vcmp.gt.f32.partialorder %v672_v48, 0.0 }
  0xcd   : > { %v737_v63 = vsel %vm705_vm9, %v672_v48, %v721_v57 }
  0xd0   : > { %v674_v10 = vpop.f32.mrf.mxu0 }
  0xd1   : > { %v675_v44 = vadd.f32 %v674_v10, %v547_v25  ;;  %v507_v10 = vpop.permute.xlu0 %506  ;;  %v760_v25 = vld [vmem:[%s1923_s3 + $0x70] sm:$0xff] }
  0xd2   : > { %v651_v5 = vadd.f32 %v1783_v2, %v507_v10  ;;  %v746_v2 = vld [vmem:[%s1923_s3] sm:$0xff] }
  0xd3   : > { %v722_v54 = vmul.f32 0.01, %v675_v44  ;;  %vm706_vm8 = vcmp.gt.f32.partialorder %v675_v44, 0.0 }
  0xd5   : > { %v738_v59 = vsel %vm706_vm8, %v675_v44, %v722_v54 }
  0xd8   : > { %v677_v11 = vpop.f32.mrf.mxu0 }
  0xd9   : > { %v678_v40 = vadd.f32 %v677_v11, %v552_v23  ;;  %v735_v11 = vsel %vm703_vm11, %v666_v55, %v719_v0  ;;  %v759_v23 = vld [vmem:[%s1923_s3 + $0x68] sm:$0xff]  ;;  %v836_v55 = vpop.permute.xlu2 %835 }
  0xdb   : > { %v723_v50 = vmul.f32 0.01, %v678_v40  ;;  %vm707_vm7 = vcmp.gt.f32.partialorder %v678_v40, 0.0 }
  0xdd   : > { %v739_v56 = vsel %vm707_vm7, %v678_v40, %v723_v50 }
  0xe0   : > { %v680_v12 = vpop.f32.mrf.mxu0 }
  0xe1   : > { %v681_v37 = vadd.f32 %v680_v12, %v557_v21  ;;  %v717_v12 = vmul.f32 0.01, %v660_v62  ;;  %v758_v21 = vld [vmem:[%s1923_s3 + $0x60] sm:$0xff] }
  0xe3   : > { %v724_v46 = vmul.f32 0.01, %v681_v37  ;;  %vm708_vm6 = vcmp.gt.f32.partialorder %v681_v37, 0.0  ;;  %v733_v4 = vsel %vm701_vm13, %v660_v62, %v717_v12 }
  0xe5   : > { %v740_v53 = vsel %vm708_vm6, %v681_v37, %v724_v46  ;;  %v846_v46 = vpop.permute.xlu0 %845 }
  0xe8   : > { %v683_v13 = vpop.f32.mrf.mxu0 }
  0xe9   : > { %v684_v34 = vadd.f32 %v683_v13, %v562_v17  ;;  %v734_v13 = vsel %vm702_vm12, %v663_v58, %v718_v9  ;;  %v714_v17 = vmul.f32 0.01, %v651_v5 }
  0xeb   : > { %v725_v42 = vmul.f32 0.01, %v684_v34  ;;  %vm709_vm5 = vcmp.gt.f32.partialorder %v684_v34, 0.0 }
  0xed   : > { %v741_v49 = vsel %vm709_vm5, %v684_v34, %v725_v42 }
  0xf0   : > { %v686_v15 = vpop.f32.mrf.mxu0 }
  0xf1   : > { %v687_v30 = vadd.f32 %v686_v15, %v567_v20  ;;  %v715_v15 = vmul.f32 0.01, %v654_v6  ;;  %v747_v20 = vld [vmem:[%s1923_s3 + $0x8] sm:$0xff] }
  0xf3   : > { %v726_v39 = vmul.f32 0.01, %v687_v30  ;;  %vm710_vm4 = vcmp.gt.f32.partialorder %v687_v30, 0.0  ;;  %v731_v3 = vsel %vm699_vm15, %v654_v6, %v715_v15  ;;  %v821_v6 = vpop.permute.xlu2 %820 }
  0xf5   : > { %v742_v45 = vsel %vm710_vm4, %v687_v30, %v726_v39  ;;  %v753_v30 = vld [vmem:[%s1923_s3 + $0x38] sm:$0xff] }
  0xf8   : > { %v689_v19 = vpop.f32.mrf.mxu0 }
  0xf9   : > { %v690_v27 = vadd.f32 %v689_v19, %v572_v16 }
  0xfb   : > { %v727_v36 = vmul.f32 0.01, %v690_v27  ;;  %vm711_vm3 = vcmp.gt.f32.partialorder %v690_v27, 0.0 }
  0xfd   : > { %v743_v41 = vsel %vm711_vm3, %v690_v27, %v727_v36  ;;  %v761_v27 = vld [vmem:[%s1923_s3 + $0x78] sm:$0xff] }
 0x100   : > { %v692_v22 = vpop.f32.mrf.mxu0 }
 0x101   : > { %v693_v24 = vadd.f32 %v692_v22, %v577_v18  ;;  %v757_v18 = vld [vmem:[%s1923_s3 + $0x58] sm:$0xff]  ;;  %v748_v22 = vld [vmem:[%s1923_s3 + $0x10] sm:$0xff] }
 0x103   : > { %v728_v32 = vmul.f32 0.01, %v693_v24  ;;  %vm712_vm2 = vcmp.gt.f32.partialorder %v693_v24, 0.0 }
 0x105   : > { %v744_v38 = vsel %vm712_vm2, %v693_v24, %v728_v32  ;;  %v749_v24 = vld [vmem:[%s1923_s3 + $0x18] sm:$0xff]  ;;  %v755_v32 = vld [vmem:[%s1923_s3 + $0x48] sm:$0xff] }
 0x108   : > { %v695_v26 = vpop.f32.mrf.mxu0 }
 0x109   : > { %v696_v28 = vadd.f32 %v695_v26, %v582_v14  ;;  %v716_v14 = vmul.f32 0.01, %v657_v7  ;;  %v750_v26 = vld [vmem:[%s1923_s3 + $0x20] sm:$0xff] }
 0x10b   : > { %vm713_vm1 = vcmp.gt.f32.partialorder %v696_v28, 0.0  ;;  %v729_v31 = vmul.f32 0.01, %v696_v28  ;;  %v732_v16 = vsel %vm700_vm14, %v657_v7, %v716_v14 }
 0x10d   : > { %v745_v35 = vsel %vm713_vm1, %v696_v28, %v729_v31  ;;  %vm698_vm1 = vcmp.gt.f32.partialorder %v651_v5, 0.0  ;;  %v751_v28 = vld [vmem:[%s1923_s3 + $0x28] sm:$0xff]  ;;  %v754_v31 = vld [vmem:[%s1923_s3 + $0x40] sm:$0xff] }
 0x10e   : > { %858 = vmatpush.msra.mxu1 %v745_v35  ;;  %1405 = vmatpush.msra.mxu3 %v745_v35  ;;  %v730_v19 = vsel %vm698_vm1, %v651_v5, %v714_v17 }
 0x110   : > { %859 = vmatpush.msra.mxu1 %v744_v38  ;;  %1406 = vmatpush.msra.mxu3 %v744_v38 }
 0x112   : > { %860 = vmatpush.msra.mxu1 %v743_v41  ;;  %1407 = vmatpush.msra.mxu3 %v743_v41  ;;  %v856_v41 = vpop.permute.xlu1 %855 }
 0x114   : > { %861 = vmatpush.msra.mxu1 %v742_v45  ;;  %1408 = vmatpush.msra.mxu3 %v742_v45 }
 0x116   : > { %862 = vmatpush.msra.mxu1 %v741_v49  ;;  %1409 = vmatpush.msra.mxu3 %v741_v49 }
 0x118   : > { %863 = vmatpush.msra.mxu1 %v740_v53  ;;  %1410 = vmatpush.msra.mxu3 %v740_v53 }
 0x11a   : > { %864 = vmatpush.msra.mxu1 %v739_v56  ;;  %1411 = vmatpush.msra.mxu3 %v739_v56  ;;  %v841_v50 = vpop.permute.xlu1 %840 }
 0x11c   : > { %865 = vmatpush.msra.mxu1 %v738_v59  ;;  %1412 = vmatpush.msra.mxu3 %v738_v59 }
 0x11e   : > { %866 = vmatpush.msra.mxu1 %v737_v63  ;;  %1413 = vmatpush.msra.mxu3 %v737_v63 }
 0x120   : > { %867 = vmatpush.msra.mxu1 %v736_v8  ;;  %1414 = vmatpush.msra.mxu3 %v736_v8  ;;  %v831_v8 = vpop.permute.xlu0 %830 }
 0x122   : > { %868 = vmatpush.msra.mxu1 %v735_v11  ;;  %1415 = vmatpush.msra.mxu3 %v735_v11  ;;  %v826_v10 = vpop.permute.xlu1 %825 }
 0x124   : > { %869 = vmatpush.msra.mxu1 %v734_v13  ;;  %1416 = vmatpush.msra.mxu3 %v734_v13 }
 0x126   : > { %870 = vmatpush.msra.mxu1 %v733_v4  ;;  %1417 = vmatpush.msra.mxu3 %v733_v4 }
 0x128   : > { %871 = vmatpush.msra.mxu1 %v732_v16  ;;  %1418 = vmatpush.msra.mxu3 %v732_v16  ;;  %v816_v12 = vpop.permute.xlu0 %815  ;;  %v806_v16 = vpop.permute.xlu2 %805 }
 0x12a   : > { %872 = vmatpush.msra.mxu1 %v731_v3  ;;  %1419 = vmatpush.msra.mxu3 %v731_v3  ;;  %v811_v5 = vpop.permute.xlu1 %810 }
 0x12c   : > { %873 = vmatpush.msra.mxu1 %v730_v19  ;;  %1420 = vmatpush.msra.mxu3 %v730_v19 }
 0x12d   : > { %874 = vmatmul.f32.vlgmr.msra.gmra.mxu1 %v746_v2  ;;  %907 = vmatmul.f32.vlgmr.msra.gmra.mxu3 %v757_v18 }
 0x130   : > { %v801_v18 = vpop.permute.xlu0 %800 }
 0x135   : > { %877 = vmatmul.f32.gmra.mxu1 %v747_v20  ;;  %910 = vmatmul.f32.gmra.mxu3 %v758_v21 }
 0x13d   : > { %880 = vmatmul.f32.gmra.mxu1 %v748_v22  ;;  %913 = vmatmul.f32.gmra.mxu3 %v759_v23  ;;  %v796_v22 = vpop.permute.xlu1 %795 }
 0x145   : > { %883 = vmatmul.f32.gmra.mxu1 %v749_v24  ;;  %916 = vmatmul.f32.gmra.mxu3 %v760_v25 }
 0x14d   : > { %886 = vmatmul.f32.gmra.mxu1 %v750_v26  ;;  %919 = vmatmul.f32.gmra.mxu3 %v761_v27 }
 0x155   : > { %889 = vmatmul.f32.gmra.mxu1 %v751_v28 }
 0x15d   : > { %892 = vmatmul.f32.gmra.mxu1 %v752_v29 }
 0x165   : > { %895 = vmatmul.f32.gmra.mxu1 %v753_v30 }
 0x16d   : > { %898 = vmatmul.f32.gmra.mxu1 %v754_v31 }
 0x175   : > { %901 = vmatmul.f32.gmra.mxu1 %v755_v32  ;;  %v791_v32 = vpop.permute.xlu2 %790 }
 0x17d   : > { %904 = vmatmul.f32.gmra.mxu1 %v756_v33 }
 0x1aa   : > { %v1849_v34 = vpop.f32.mrf.mxu1 }
 0x1b0   : > { %v908_v35 = vpop.f32.mrf.mxu3 }
 0x1b1   : > { %v909_v56 = vadd.f32 %v908_v35, %v836_v55  ;;  %v976_v55 = vld [vmem:[%s1925_s5 + $0x28] sm:$0xff] }
 0x1b2   : > { %v1851_v36 = vpop.f32.mrf.mxu1 }
 0x1b3   : > { %v950_v62 = vmul.f32 0.01, %v909_v56  ;;  %vm934_vm6 = vcmp.gt.f32.partialorder %v909_v56, 0.0 }
 0x1b5   : > { %v966_v1 = vsel %vm934_vm6, %v909_v56, %v950_v62  ;;  %v977_v56 = vld [vmem:[%s1925_s5 + $0x30] sm:$0xff] }
 0x1b8   : > { %v911_v37 = vpop.f32.mrf.mxu3 }
 0x1b9   : > { %v912_v52 = vadd.f32 %v911_v37, %v841_v50  ;;  %v971_v50 = vld [vmem:[%s1925_s5] sm:$0xff] }
 0x1ba   : > { %v1853_v38 = vpop.f32.mrf.mxu1 }
 0x1bb   : > { %v951_v60 = vmul.f32 0.01, %v912_v52  ;;  %vm935_vm5 = vcmp.gt.f32.partialorder %v912_v52, 0.0  ;;  %v882_v33 = vadd.f32 %v1853_v38, %v791_v32 }
 0x1bd   : > { %v967_v0 = vsel %vm935_vm5, %v912_v52, %v951_v60  ;;  %vm925_vm15 = vcmp.gt.f32.partialorder %v882_v33, 0.0  ;;  %v973_v52 = vld [vmem:[%s1925_s5 + $0x10] sm:$0xff] }
 0x1c0   : > { %v914_v39 = vpop.f32.mrf.mxu3 }
 0x1c1   : > { %v915_v48 = vadd.f32 %v914_v39, %v846_v46  ;;  %v786_v39 = vpop.permute.xlu0 %785  ;;  %v941_v46 = vmul.f32 0.01, %v882_v33 }
 0x1c2   : > { %v1855_v40 = vpop.f32.mrf.mxu1 }
 0x1c3   : > { %v952_v58 = vmul.f32 0.01, %v915_v48  ;;  %vm936_vm4 = vcmp.gt.f32.partialorder %v915_v48, 0.0  ;;  %v885_v29 = vadd.f32 %v1855_v40, %v796_v22 }
 0x1c5   : > { %v968_v61 = vsel %vm936_vm4, %v915_v48, %v952_v58  ;;  %vm926_vm14 = vcmp.gt.f32.partialorder %v885_v29, 0.0  ;;  %v957_v48 = vsel %vm925_vm15, %v882_v33, %v941_v46  ;;  %v1092_v33 = vld [vmem:[%s1927_s7] sm:$0xff] }
 0x1c8   : > { %v917_v42 = vpop.f32.mrf.mxu3 }
 0x1c9   : > { %v918_v45 = vadd.f32 %v917_v42, %v851_v43  ;;  %v942_v43 = vmul.f32 0.01, %v885_v29 }
 0x1ca   : > { %v887_v44 = vpop.f32.mrf.mxu1 }
 0x1cb   : > { %v953_v54 = vmul.f32 0.01, %v918_v45  ;;  %vm937_vm3 = vcmp.gt.f32.partialorder %v918_v45, 0.0  ;;  %v888_v26 = vadd.f32 %v887_v44, %v801_v18  ;;  %v781_v44 = vpop.permute.xlu1 %780 }
 0x1cc   : > { %v876_v40 = vadd.f32 %v1849_v34, %v781_v44  ;;  %v972_v34 = vld [vmem:[%s1925_s5 + $0x8] sm:$0xff] }
 0x1cd   : > { %v969_v59 = vsel %vm937_vm3, %v918_v45, %v953_v54  ;;  %v943_v37 = vmul.f32 0.01, %v888_v26  ;;  %vm927_vm13 = vcmp.gt.f32.partialorder %v888_v26, 0.0  ;;  %v975_v54 = vld [vmem:[%s1925_s5 + $0x20] sm:$0xff] }
 0x1cf   : > { %v959_v45 = vsel %vm927_vm13, %v888_v26, %v943_v37  ;;  %v1093_v37 = vld [vmem:[%s1927_s7 + $0x8] sm:$0xff] }
 0x1d0   : > { %v920_v47 = vpop.f32.mrf.mxu3 }
 0x1d1   : > { %v921_v49 = vadd.f32 %v920_v47, %v856_v41  ;;  %v879_v41 = vadd.f32 %v1851_v36, %v786_v39  ;;  %v958_v47 = vsel %vm926_vm14, %v885_v29, %v942_v43  ;;  %v1094_v39 = vld [vmem:[%s1927_s7 + $0x10] sm:$0xff] }
 0x1d2   : > { %v890_v51 = vpop.f32.mrf.mxu1 }
 0x1d3   : > { %vm938_vm2 = vcmp.gt.f32.partialorder %v921_v49, 0.0  ;;  %v954_v53 = vmul.f32 0.01, %v921_v49  ;;  %v891_v23 = vadd.f32 %v890_v51, %v806_v16  ;;  %v940_v38 = vmul.f32 0.01, %v879_v41 }
 0x1d4   : > { %vm924_vm1 = vcmp.gt.f32.partialorder %v879_v41, 0.0 }
 0x1d5   : > { %v970_v57 = vsel %vm938_vm2, %v921_v49, %v954_v53  ;;  %v944_v31 = vmul.f32 0.01, %v891_v23  ;;  %vm928_vm12 = vcmp.gt.f32.partialorder %v891_v23, 0.0  ;;  %v939_v49 = vmul.f32 0.01, %v876_v40  ;;  %v974_v53 = vld [vmem:[%s1925_s5 + $0x18] sm:$0xff] }
 0x1d6   : > { %1027 = vmatpush.msra.mxu2 %v970_v57  ;;  %vm923_vm2 = vcmp.gt.f32.partialorder %v876_v40, 0.0  ;;  %v956_v36 = vsel %vm924_vm1, %v879_v41, %v940_v38  ;;  %v978_v57 = vld [vmem:[%s1925_s5 + $0x38] sm:$0xff]  ;;  %vm1188_vm1 = vcmask 261120  }
 0x1d7   : > { %v960_v42 = vsel %vm928_vm12, %v891_v23, %v944_v31  ;;  %v955_v51 = vsel %vm923_vm2, %v876_v40, %v939_v49  ;;  %v1095_v41 = vld [vmem:[%s1927_s7 + $0x18] sm:$0xff] }
 0x1d8   : > { %1028 = vmatpush.msra.mxu2 %v969_v59 }
 0x1da   : > { %v893_v63 = vpop.f32.mrf.mxu1  ;;  %1029 = vmatpush.msra.mxu2 %v968_v61 }
 0x1db   : > { %v894_v19 = vadd.f32 %v893_v63, %v811_v5 }
 0x1dc   : > { %1030 = vmatpush.msra.mxu2 %v967_v0  ;;  %v1025_v0 = vpop.permute.xlu2 %1024 }
 0x1dd   : > { %v945_v28 = vmul.f32 0.01, %v894_v19  ;;  %vm929_vm11 = vcmp.gt.f32.partialorder %v894_v19, 0.0 }
 0x1de   : > { %1031 = vmatpush.msra.mxu2 %v966_v1  ;;  %v1020_v1 = vpop.permute.xlu0 %1019 }
 0x1df   : > { %v961_v35 = vsel %vm929_vm11, %v894_v19, %v945_v28  ;;  %vm1120_vm11 = vcmask 523264  }
 0x1e2   : > { %v896_v7 = vpop.f32.mrf.mxu1 }
 0x1e3   : > { %v897_v17 = vadd.f32 %v896_v7, %v816_v12 }
 0x1e5   : > { %v946_v25 = vmul.f32 0.01, %v897_v17  ;;  %vm930_vm10 = vcmp.gt.f32.partialorder %v897_v17, 0.0 }
 0x1e7   : > { %v962_v30 = vsel %vm930_vm10, %v897_v17, %v946_v25 }
 0x1ea   : > { %v899_v9 = vpop.f32.mrf.mxu1 }
 0x1eb   : > { %v900_v4 = vadd.f32 %v899_v9, %v821_v6  ;;  %v1010_v9 = vpop.permute.xlu2 %1009  ;;  %v1005_v6 = vpop.permute.xlu0 %1004 }
 0x1ed   : > { %v947_v21 = vmul.f32 0.01, %v900_v4  ;;  %vm931_vm9 = vcmp.gt.f32.partialorder %v900_v4, 0.0 }
 0x1ef   : > { %v963_v27 = vsel %vm931_vm9, %v900_v4, %v947_v21 }
 0x1f2   : > { %v902_v11 = vpop.f32.mrf.mxu1 }
 0x1f3   : > { %v903_v13 = vadd.f32 %v902_v11, %v826_v10 }
 0x1f5   : > { %v948_v2 = vmul.f32 0.01, %v903_v13  ;;  %vm932_vm8 = vcmp.gt.f32.partialorder %v903_v13, 0.0 }
 0x1f7   : > { %v964_v24 = vsel %vm932_vm8, %v903_v13, %v948_v2 }
 0x1fa   : > { %v905_v14 = vpop.f32.mrf.mxu1 }
 0x1fb   : > { %v906_v15 = vadd.f32 %v905_v14, %v831_v8  ;;  %v1015_v8 = vpop.permute.xlu1 %1014 }
 0x1fd   : > { %vm933_vm7 = vcmp.gt.f32.partialorder %v906_v15, 0.0  ;;  %v949_v3 = vmul.f32 0.01, %v906_v15 }
 0x1ff   : > { %v965_v20 = vsel %vm933_vm7, %v906_v15, %v949_v3 }
 0x200   : > { %1032 = vmatpush.msra.mxu2 %v965_v20  ;;  %v995_v20 = vpop.permute.xlu2 %994 }
 0x202   : > { %1033 = vmatpush.msra.mxu2 %v964_v24  ;;  %v990_v24 = vpop.permute.xlu0 %989 }
 0x203   : > { %v1000_v3 = vpop.permute.xlu1 %999 }
 0x204   : > { %1034 = vmatpush.msra.mxu2 %v963_v27 }
 0x206   : > { %1035 = vmatpush.msra.mxu2 %v962_v30 }
 0x208   : > { %1036 = vmatpush.msra.mxu2 %v961_v35 }
 0x20a   : > { %1037 = vmatpush.msra.mxu2 %v960_v42 }
 0x20b   : > { %v1118_v44 = vpop.permute.xlu1 %1117 }
 0x20c   : > { %1038 = vmatpush.msra.mxu2 %v959_v45  ;;  %v1113_v45 = vpop.permute.xlu2 %1112 }
 0x20e   : > { %1039 = vmatpush.msra.mxu2 %v958_v47  ;;  %v1108_v47 = vpop.permute.xlu0 %1107 }
 0x210   : > { %1040 = vmatpush.msra.mxu2 %v957_v48 }
 0x212   : > { %1041 = vmatpush.msra.mxu2 %v956_v36 }
 0x213   : > { %v1103_v36 = vpop.permute.xlu1 %1102 }
 0x214   : > { %1042 = vmatpush.msra.mxu2 %v955_v51 }
 0x215   : > { %1043 = vmatmul.f32.vlgmr.msra.gmra.mxu2 %v971_v50 }
 0x21d   : > { %1046 = vmatmul.f32.gmra.mxu2 %v972_v34 }
 0x225   : > { %1049 = vmatmul.f32.gmra.mxu2 %v973_v52 }
 0x22d   : > { %1052 = vmatmul.f32.gmra.mxu2 %v974_v53 }
 0x235   : > { %1055 = vmatmul.f32.gmra.mxu2 %v975_v54 }
 0x23d   : > { %1058 = vmatmul.f32.gmra.mxu2 %v976_v55 }
 0x245   : > { %1061 = vmatmul.f32.gmra.mxu2 %v977_v56 }
 0x24d   : > { %1064 = vmatmul.f32.gmra.mxu2 %v978_v57  ;;  %v1174_v57 = vld [vmem:[%s1929_s9] sm:$0xff] }
 0x298   : > { %v1044_v58 = vpop.f32.mrf.mxu2 }
 0x299   : > { %v1045_v25 = vadd.f32 %v1044_v58, %v990_v24 }
 0x29b   : > { %v1076_v31 = vmul.f32 0.01, %v1045_v25  ;;  %vm1068_vm10 = vcmp.gt.f32.partialorder %v1045_v25, 0.0 }
 0x29d   : > { %v1084_v35 = vsel %vm1068_vm10, %v1045_v25, %v1076_v31 }
 0x2a0   : > { %v1047_v59 = vpop.f32.mrf.mxu2 }
 0x2a1   : > { %v1048_v21 = vadd.f32 %v1047_v59, %v995_v20  ;;  %v1175_v59 = vld [vmem:[%s1929_s9 + $0x8] sm:$0xff] }
 0x2a3   : > { %v1077_v29 = vmul.f32 0.01, %v1048_v21  ;;  %vm1069_vm9 = vcmp.gt.f32.partialorder %v1048_v21, 0.0 }
 0x2a5   : > { %v1085_v32 = vsel %vm1069_vm9, %v1048_v21, %v1077_v29 }
 0x2a8   : > { %v1050_v60 = vpop.f32.mrf.mxu2 }
 0x2a9   : > { %v1051_v2 = vadd.f32 %v1050_v60, %v1000_v3 }
 0x2ab   : > { %v1078_v27 = vmul.f32 0.01, %v1051_v2  ;;  %vm1070_vm8 = vcmp.gt.f32.partialorder %v1051_v2, 0.0 }
 0x2ad   : > { %v1086_v30 = vsel %vm1070_vm8, %v1051_v2, %v1078_v27 }
 0x2b0   : > { %v1053_v61 = vpop.f32.mrf.mxu2 }
 0x2b1   : > { %v1054_v15 = vadd.f32 %v1053_v61, %v1005_v6  ;;  %v1181_v61 = vpop.permute.xlu0 %1180 }
 0x2b3   : > { %v1079_v23 = vmul.f32 0.01, %v1054_v15  ;;  %vm1071_vm7 = vcmp.gt.f32.partialorder %v1054_v15, 0.0 }
 0x2b5   : > { %v1087_v28 = vsel %vm1071_vm7, %v1054_v15, %v1079_v23  ;;  %vm1292_vm7 = vcmask 125952  }
 0x2b8   : > { %v1056_v62 = vpop.f32.mrf.mxu2 }
 0x2b9   : > { %v1057_v13 = vadd.f32 %v1056_v62, %v1010_v9 }
 0x2bb   : > { %v1080_v19 = vmul.f32 0.01, %v1057_v13  ;;  %vm1072_vm6 = vcmp.gt.f32.partialorder %v1057_v13, 0.0 }
 0x2bd   : > { %v1088_v26 = vsel %vm1072_vm6, %v1057_v13, %v1080_v19 }
 0x2c0   : > { %v1059_v63 = vpop.f32.mrf.mxu2 }
 0x2c1   : > { %v1060_v12 = vadd.f32 %v1059_v63, %v1015_v8  ;;  %v1186_v63 = vpop.permute.xlu2 %1185 }
 0x2c3   : > { %v1081_v17 = vmul.f32 0.01, %v1060_v12  ;;  %vm1073_vm5 = vcmp.gt.f32.partialorder %v1060_v12, 0.0 }
 0x2c5   : > { %v1089_v22 = vsel %vm1073_vm5, %v1060_v12, %v1081_v17 }
 0x2c8   : > { %v1062_v7 = vpop.f32.mrf.mxu2 }
 0x2c9   : > { %v1063_v10 = vadd.f32 %v1062_v7, %v1020_v1 }
 0x2cb   : > { %v1082_v4 = vmul.f32 0.01, %v1063_v10  ;;  %vm1074_vm4 = vcmp.gt.f32.partialorder %v1063_v10, 0.0 }
 0x2cd   : > { %v1090_v18 = vsel %vm1074_vm4, %v1063_v10, %v1082_v4  ;;  %v1224_v10 = vld [vmem:[%s1931_s11] sm:$0xf]  ;;  %vm1254_vm4 = vcmask 1047680  }
 0x2d0   : > { %v1065_v11 = vpop.f32.mrf.mxu2 }
 0x2d1   : > { %v1066_v5 = vadd.f32 %v1065_v11, %v1025_v0  ;;  %v1229_v11 = vpop.permute.xlu1 %1228 }
 0x2d3   : > { %vm1075_vm3 = vcmp.gt.f32.partialorder %v1066_v5, 0.0  ;;  %v1083_v14 = vmul.f32 0.01, %v1066_v5 }
 0x2d5   : > { %v1091_v16 = vsel %vm1075_vm3, %v1066_v5, %v1083_v14 }
 0x2d6   : > { %1141 = vmatpush.msrb.mxu3 %v1091_v16  ;;  %v1261_v16 = vlaneseq }
 0x2d8   : > { %1142 = vmatpush.msrb.mxu3 %v1090_v18  ;;  %v1262_v17 = vand.u32 127, %v1261_v16 }
 0x2da   : > { %1143 = vmatpush.msrb.mxu3 %v1089_v22  ;;  %v1263_v3 = vand.u32 1, %v1262_v17 }
 0x2dc   : > { %1144 = vmatpush.msrb.mxu3 %v1088_v26 }
 0x2de   : > { %1145 = vmatpush.msrb.mxu3 %v1087_v28 }
 0x2e0   : > { %1146 = vmatpush.msrb.mxu3 %v1086_v30 }
 0x2e2   : > { %1147 = vmatpush.msrb.mxu3 %v1085_v32 }
 0x2e4   : > { %1148 = vmatpush.msrb.mxu3 %v1084_v35 }
 0x2e5   : > { %1395 = vmatmul.msk.f32.vlgmr.msrb.gmra.mxu3 %vm1120_vm11, %v1092_v33 }
 0x2ed   : > { %1396 = vmatmul.msk.f32.gmra.mxu3 %vm1120_vm11, %v1093_v37 }
 0x2f5   : > { %1397 = vmatmul.msk.f32.gmra.mxu3 %vm1120_vm11, %v1094_v39 }
 0x2fd   : > { %1398 = vmatmul.msk.f32.gmra.mxu3 %vm1120_vm11, %v1095_v41 }
 0x368   : > { %v1150_v42 = vpop.f32.mrf.mxu3 }
 0x369   : > { %v1151_v50 = vadd.f32 %v1150_v42, %v1103_v36 }
 0x36b   : > { %v1166_v54 = vmul.f32 0.01, %v1151_v50  ;;  %vm1162_vm15 = vcmp.gt.f32.partialorder %v1151_v50, 0.0 }
 0x36d   : > { %v1170_v58 = vsel %vm1162_vm15, %v1151_v50, %v1166_v54 }
 0x370   : > { %v1153_v43 = vpop.f32.mrf.mxu3 }
 0x371   : > { %v1154_v48 = vadd.f32 %v1153_v43, %v1108_v47 }
 0x373   : > { %v1167_v52 = vmul.f32 0.01, %v1154_v48  ;;  %vm1163_vm14 = vcmp.gt.f32.partialorder %v1154_v48, 0.0 }
 0x375   : > { %v1171_v56 = vsel %vm1163_vm14, %v1154_v48, %v1167_v52 }
 0x378   : > { %v1156_v40 = vpop.f32.mrf.mxu3 }
 0x379   : > { %v1157_v46 = vadd.f32 %v1156_v40, %v1113_v45 }
 0x37b   : > { %v1168_v51 = vmul.f32 0.01, %v1157_v46  ;;  %vm1164_vm13 = vcmp.gt.f32.partialorder %v1157_v46, 0.0 }
 0x37d   : > { %v1172_v55 = vsel %vm1164_vm13, %v1157_v46, %v1168_v51 }
 0x380   : > { %v1159_v38 = vpop.f32.mrf.mxu3 }
 0x381   : > { %v1160_v49 = vadd.f32 %v1159_v38, %v1118_v44 }
 0x383   : > { %vm1165_vm12 = vcmp.gt.f32.partialorder %v1160_v49, 0.0  ;;  %v1169_v34 = vmul.f32 0.01, %v1160_v49 }
 0x385   : > { %v1173_v53 = vsel %vm1165_vm12, %v1160_v49, %v1169_v34 }
 0x386   : > { %1207 = vmatpush.msra.mxu3 %v1173_v53 }
 0x388   : > { %1208 = vmatpush.msra.mxu3 %v1172_v55 }
 0x38a   : > { %1209 = vmatpush.msra.mxu3 %v1171_v56 }
 0x38c   : > { %1210 = vmatpush.msra.mxu3 %v1170_v58 }
 0x38d   : > { %1399 = vmatmul.msk.f32.vlgmr.msra.gmra.mxu3 %vm1188_vm1, %v1174_v57 }
 0x395   : > { %1400 = vmatmul.msk.f32.gmra.mxu3 %vm1188_vm1, %v1175_v59 }
 0x410   : > { %v1212_v60 = vpop.f32.mrf.mxu3 }
 0x411   : > { %v1213_v62 = vadd.f32 %v1212_v60, %v1181_v61 }
 0x413   : > { %v1220_v7 = vmul.f32 0.01, %v1213_v62  ;;  %vm1218_vm3 = vcmp.gt.f32.partialorder %v1213_v62, 0.0 }
 0x415   : > { %v1222_v6 = vsel %vm1218_vm3, %v1213_v62, %v1220_v7 }
 0x418   : > { %v1215_v0 = vpop.f32.mrf.mxu3 }
 0x419   : > { %v1216_v1 = vadd.f32 %v1215_v0, %v1186_v63 }
 0x41b   : > { %vm1219_vm2 = vcmp.gt.f32.partialorder %v1216_v1, 0.0  ;;  %v1221_v8 = vmul.f32 0.01, %v1216_v1 }
 0x41d   : > { %v1223_v9 = vsel %vm1219_vm2, %v1216_v1, %v1221_v8 }
 0x41e   : > { %1248 = vmatpush.msrb.mxu3 %v1223_v9 }
 0x420   : > { %1249 = vmatpush.msrb.mxu3 %v1222_v6 }
 0x421   : > { %1401 = vmatmul.msk.f32.vlgmr.msrb.gmra.mxu3 %vm584_vm0, %v1224_v10  ;;  %vm1264_vm0 = vcmp.eq.s32.totalorder %v1263_v3, 0 }
 0x4a4   : > { %v1251_v12 = vpop.f32.mrf.mxu3 }
 0x4a5   : > { %v1252_v5 = vadd.f32 %v1251_v12, %v1229_v11 }
 0x4a7   : > { %1255 = vrot.lane.b32.xlu2 %v1252_v5, %s1481_s22 }
 0x501   : > { %v1256_v13 = vpop.permute.xlu2 %1255 }
 0x502   : > { %v1257_v14 = vsel %vm1254_vm4, %v1256_v13, %v1252_v5 }
 0x503   : > { %1258 = vrot.lane.b32.xlu0 %v1257_v14, %s1481_s22 }
 0x575   : > { %v1259_v4 = vpop.permute.xlu0 %1258 }
 0x576   : > { %v1260_v15 = vsel %vm1254_vm4, %v1259_v4, %v1252_v5 }
 0x577   : > { %1269 = vrot.lane.b32.xlu2 %v1260_v15, %s1482_s23  ;;  %1266 = vrot.lane.b32.xlu1 %v1260_v15, %s1483_s24 }
 0x5d1   : > { %v1270_v2 = vpop.permute.xlu2 %1269 }
 0x5e9   : > { %v1267_v18 = vpop.permute.xlu1 %1266 }
 0x5ea   : > { %v1272_v19 = vsel %vm1264_vm0, %v1267_v18, %v1270_v2 }
 0x5eb   : > { %v1273_v20 = vsub.f32 %v1272_v19, %v1252_v5 }
 0x5ed   : > { %v1274_v21 = vmul.f32 1.442695, %v1273_v20 }
 0x5ef   : > { %1452 = vpow2.f32 %v1274_v21 }
 0x5f5   : > { %v1453_v22 = vpop.eup %1452 }
 0x5f6   : > { %v1276_v23 = vadd.f32 1.0, %v1453_v22 }
 0x5f8   : > { %1454 = vrcp.f32 %v1276_v23  ;;  %v1288_v27 = vand.u32 2147483648, %v1276_v23  ;;  %v1286_v29 = vand.u32 2147483647, %v1276_v23  ;;  %vm1282_vm6 = vweird.f32 %v1276_v23 }
 0x5fa   : > { %v1289_v31 = vor.u32 1.1754944e-38, %v1288_v27  ;;  %vm1287_vm9 = vcmp.eq.f32.partialorder %v1286_v29, 8.507059e+37 }
 0x5fe   : > { %v1455_v24 = vpop.eup %1454 }
 0x5ff   : > { %v1278_v25 = vmul.f32 %v1455_v24, %v1276_v23  ;;  %vm1283_vm5 = vweird.f32 %v1455_v24 }
 0x600   : > { %vm1284_vm8 = vmor %vm1282_vm6, %vm1283_vm5 }
 0x601   : > { %v1279_v26 = vsub.f32 1.0, %v1278_v25 }
 0x603   : > { %v1280_v28 = vmul.f32 %v1455_v24, %v1279_v26 }
 0x605   : > { %v1281_v30 = vadd.f32 %v1455_v24, %v1280_v28 }
 0x607   : > { %v1285_v32 = vsel %vm1284_vm8, %v1455_v24, %v1281_v30 }
 0x608   : > { %v1290_v33 = vsel %vm1287_vm9, %v1289_v31, %v1285_v32 }
 0x609   : > { %1293 = vst.msk [vmem:[%s469_s15] sm:$0xf] %vm1292_vm7, %v1290_v33 }
 0x60a PF: > { %s23_s27 = sadd.s32 1, %s1478_s27   ;;  %s1934_s25 = smov %s1474_s26 }
 0x60b   : > { %p20_p5 = scmp.ge.s32.totalorder %s23_s27, 4   ;;  %s1935_s26 = smov %s1937_s28 }
 0x60d   :  { %22 = sbr.rel (!%p20_p5) target bundleno = 2 (0x2), region = 102 }

</bundles_post_ra>
